<compile_context>
chip_gen: v5e
topology: v5e:2x2
jax: 0.10.0
libtpu: 0.0.40
codegen_flags: <defaults>
</compile_context>

<pallas_src>
import functools
import math

import jax
import jax.numpy as jnp
from jax.experimental import pallas as pl
from jax.experimental.pallas import tpu as pltpu

# ---- problem sizes (small, consistent with the module's forward) ----
BATCH = 2           # batch_size
N_NEWS = 8          # num_clicked_news_a_user
EMB = 64            # word_embedding_dim
HEADS = 4           # num_attention_heads
D_K = EMB // HEADS  # per-head dim
QDIM = 32           # query_vector_dim


def _user_encoder_kernel(x_ref, wqkv_ref, wa_ref, ba_ref, qv_ref, out_ref,
                         *, num_heads):
    """One block of users per grid step.

    x_ref:    (Bb, N, D)   VMEM, f32
    wqkv_ref: (D, 3*D)     fused [Wq*1/sqrt(dk) | Wk | Wv]  (matmul dtype)
    wa_ref:   (D, QDIM)                                     (matmul dtype)
    ba_ref:   (1, QDIM)    f32
    qv_ref:   (1, QDIM)    f32
    out_ref:  (Bb, D)      f32
    """
    B, N, D = x_ref.shape
    H = num_heads
    Dk = D // H
    mm_dtype = wqkv_ref.dtype  # MXU operand dtype (f32 default, bf16 optional)

    x2 = x_ref[...].reshape(B * N, D)

    # --- fused QKV projection: one wide MXU matmul, f32 accumulation ---
    qkv = jnp.dot(x2.astype(mm_dtype), wqkv_ref[...],
                  preferred_element_type=jnp.float32)          # (B*N, 3D)
    qkv = qkv.reshape(B, N, 3 * D)

    # --- multi-head self attention (scale already folded into Wq) ---
    ctx_heads = []
    for h in range(H):
        lo = h * Dk
        qh = qkv[:, :, lo:lo + Dk]                             # (B, N, Dk)
        kh = qkv[:, :, D + lo:D + lo + Dk]                     # (B, N, Dk)
        vh = qkv[:, :, 2 * D + lo:2 * D + lo + Dk]             # (B, N, Dk)

        s = jnp.einsum("bqd,bkd->bqk",
                       qh.astype(mm_dtype), kh.astype(mm_dtype),
                       preferred_element_type=jnp.float32)     # (B, N, N)
        s = s - jnp.max(s, axis=-1, keepdims=True)
        p = jnp.exp(s)
        p = p / jnp.sum(p, axis=-1, keepdims=True)             # exact divide
        ctx_heads.append(
            jnp.einsum("bqk,bkd->bqd",
                       p.astype(mm_dtype), vh.astype(mm_dtype),
                       preferred_element_type=jnp.float32))
    ctx = jnp.concatenate(ctx_heads, axis=-1)                  # (B, N, D)

    # --- additive attention pooling over the news axis ---
    ctx2 = ctx.reshape(B * N, D)
    t = jnp.tanh(jnp.dot(ctx2.astype(mm_dtype), wa_ref[...],
                         preferred_element_type=jnp.float32)
                 + ba_ref[...])                                # (B*N, QDIM)
    # score = t . q_vec  as VPU multiply + lane reduce (no transposed matmul)
    w = jnp.sum(t * qv_ref[...], axis=-1, keepdims=True)       # (B*N, 1)
    w = w.reshape(B, N, 1)
    w = w - jnp.max(w, axis=1, keepdims=True)
    pw = jnp.exp(w)
    pw = pw / jnp.sum(pw, axis=1, keepdims=True)               # exact divide

    # pooled[b, :] = sum_n pw[b, n] * ctx[b, n, :]  (VPU mul + sublane reduce)
    pooled = jnp.sum(pw * ctx, axis=1)                         # (B, D)
    out_ref[...] = pooled.astype(out_ref.dtype)


def prepare_user_encoder_params(wq, wk, wv, wa, ba, qv, *,
                                num_heads=HEADS,
                                matmul_dtype=jnp.float32):
    """Once-per-model weight fusion (hoisted off the per-call path).

    * Concatenates [Wq | Wk | Wv] into one (D, 3D) weight (single MXU matmul,
      one weight DMA stream) and pre-folds 1/sqrt(d_k) into the Wq columns.
    * matmul_dtype: dtype of MXU matmul operands.  Use jnp.bfloat16 on v6e/v7x
      (halved operand traffic); keep jnp.float32 on v5e and for bit-tight
      parity with the f32 reference.
    """
    d_k = wq.shape[0] // num_heads
    scale = 1.0 / math.sqrt(d_k)
    wqkv = jnp.concatenate([wq * scale, wk, wv], axis=1).astype(matmul_dtype)
    return (wqkv, wa.astype(matmul_dtype),
            ba.astype(jnp.float32), qv.astype(jnp.float32))


@functools.partial(jax.jit, static_argnames=("num_heads", "users_per_block"))
def user_encoder(user_vector, wqkv, wa, ba, qv, *,
                 num_heads=HEADS, users_per_block=None):
    """Pallas forward of UserEncoder given pre-fused parameters.

    The user/batch axis is tiled over a "parallel" grid axis so large batches
    amortize fixed per-call overhead and use both TensorCores on v7x.
    """
    B, N, D = user_vector.shape
    Q = wa.shape[1]

    if users_per_block is None:
        users_per_block = B if B <= 8 else 8
    ub = users_per_block
    G = pl.cdiv(B, ub)
    Bp = G * ub

    x = user_vector
    if Bp != B:  # pad ragged tail; padded rows are discarded after the call
        x = jnp.pad(x, ((0, Bp - B), (0, 0), (0, 0)))

    out = pl.pallas_call(
        functools.partial(_user_encoder_kernel, num_heads=num_heads),
        out_shape=jax.ShapeDtypeStruct((Bp, D), user_vector.dtype),
        grid_spec=pltpu.PrefetchScalarGridSpec(
            num_scalar_prefetch=0,
            grid=(G,),
            in_specs=[
                pl.BlockSpec((ub, N, D), lambda g: (g, 0, 0)),
                pl.BlockSpec((D, 3 * D), lambda g: (0, 0)),
                pl.BlockSpec((D, Q), lambda g: (0, 0)),
                pl.BlockSpec((1, Q), lambda g: (0, 0)),
                pl.BlockSpec((1, Q), lambda g: (0, 0)),
            ],
            out_specs=pl.BlockSpec((ub, D), lambda g: (g, 0)),
        ),
        compiler_params=pltpu.CompilerParams(
            dimension_semantics=("parallel",)),
    )(x, wqkv, wa, ba, qv)
    return out[:B]


def user_encoder_ref(x, wq, wk, wv, wa, ba, qv):
    """Pure-JAX reference mirroring the PyTorch forward (all f32)."""
    B, N, D = x.shape
    q = x @ wq
    k = x @ wk
    v = x @ wv
    qh = q.reshape(B, N, HEADS, D_K).transpose(0, 2, 1, 3)
    kh = k.reshape(B, N, HEADS, D_K).transpose(0, 2, 1, 3)
    vh = v.reshape(B, N, HEADS, D_K).transpose(0, 2, 1, 3)
    s = jnp.einsum("bhqd,bhkd->bhqk", qh, kh) / math.sqrt(D_K)
    p = jax.nn.softmax(s, axis=-1)
    ctx = jnp.einsum("bhqk,bhkd->bhqd", p, vh)
    ctx = ctx.transpose(0, 2, 1, 3).reshape(B, N, D)
    t = jnp.tanh(ctx @ wa + ba[0])
    w = jax.nn.softmax(jnp.einsum("bnq,q->bn", t, qv[0]), axis=1)
    return jnp.einsum("bn,bnd->bd", w, ctx)


if __name__ == "__main__":
    key = jax.random.PRNGKey(0)
    kx, kq, kk, kv, ka, kb, kqv = jax.random.split(key, 7)

    # deterministic synthetic parameters (shapes from the module's __init__)
    x = jax.random.normal(kx, (BATCH, N_NEWS, EMB), dtype=jnp.float32)
    wq = jax.random.normal(kq, (EMB, EMB), dtype=jnp.float32) * 0.05
    wk = jax.random.normal(kk, (EMB, EMB), dtype=jnp.float32) * 0.05
    wv = jax.random.normal(kv, (EMB, EMB), dtype=jnp.float32) * 0.05
    wa = jax.random.normal(ka, (EMB, QDIM), dtype=jnp.float32) * 0.05
    ba = jax.random.normal(kb, (1, QDIM), dtype=jnp.float32) * 0.05
    qv = jax.random.uniform(kqv, (1, QDIM), dtype=jnp.float32,
                            minval=-0.1, maxval=0.1)

    # Weight fusion happens once (amortized); the apply itself is jitted.
    fused = prepare_user_encoder_params(wq, wk, wv, wa, ba, qv)
    fused = jax.block_until_ready(fused)

    out = user_encoder(x, *fused)
    out = jax.block_until_ready(out)

    ref = user_encoder_ref(x, wq, wk, wv, wa, ba, qv)
    assert out.shape == (BATCH, EMB)
    # exact softmax divides (no approx reciprocal) -> tight parity with the ref
    assert jnp.allclose(out, ref, atol=5e-4, rtol=5e-4), \
        float(jnp.max(jnp.abs(out - ref)))
    print("KERNEL_OK")
</pallas_src>

<mosaic_0001>
module attributes {stable_mosaic.version = 11 : i64} {
  func.func @_user_encoder_kernel(%arg0: i32, %arg1: memref<2x8x64xf32, #tpu.memory_space<vmem>>, %arg2: memref<64x192xf32, #tpu.memory_space<vmem>>, %arg3: memref<64x32xf32, #tpu.memory_space<vmem>>, %arg4: memref<1x32xf32, #tpu.memory_space<vmem>>, %arg5: memref<1x32xf32, #tpu.memory_space<vmem>>, %arg6: memref<2x64xf32, #tpu.memory_space<vmem>>) attributes {dimension_semantics = [#tpu.dimension_semantics<parallel>], iteration_bounds = array<i64: 1>, scalar_prefetch = 0 : i64, scratch_operands = 0 : i64, tpu.core_type = #tpu.core_type<tc>, window_params = [{transform_indices = @transform_0, window_bounds = array<i64: 2, 8, 64>}, {pipeline_mode = #tpu.pipeline_mode<synchronous>, transform_indices = @transform_1, window_bounds = array<i64: 64, 192>}, {pipeline_mode = #tpu.pipeline_mode<synchronous>, transform_indices = @transform_2, window_bounds = array<i64: 64, 32>}, {pipeline_mode = #tpu.pipeline_mode<synchronous>, transform_indices = @transform_3, window_bounds = array<i64: 1, 32>}, {pipeline_mode = #tpu.pipeline_mode<synchronous>, transform_indices = @transform_4, window_bounds = array<i64: 1, 32>}, {transform_indices = @transform_5, window_bounds = array<i64: 2, 64>}]} {
    %c0 = arith.constant 0 : index
    %c0_0 = arith.constant 0 : index
    %c0_1 = arith.constant 0 : index
    %0 = vector.load %arg1[%c0, %c0_0, %c0_1] : memref<2x8x64xf32, #tpu.memory_space<vmem>>, vector<2x8x64xf32>
    %1 = vector.shape_cast %0 : vector<2x8x64xf32> to vector<16x64xf32>
    %c0_2 = arith.constant 0 : index
    %c0_3 = arith.constant 0 : index
    %2 = vector.load %arg2[%c0_2, %c0_3] : memref<64x192xf32, #tpu.memory_space<vmem>>, vector<64x192xf32>
    %cst = arith.constant dense<0.000000e+00> : vector<16x192xf32>
    %3 = tpu.matmul %1, %2, %cst {dimension_numbers = #tpu.dot_dimension_numbers<[1], [0], [0], [1], [0, 0, 1, 1], [], []>} : vector<16x64xf32>, vector<64x192xf32>, vector<16x192xf32> -> vector<16x192xf32>
    %4 = vector.shape_cast %3 : vector<16x192xf32> to vector<2x8x192xf32>
    %5 = vector.extract_strided_slice %4 {offsets = [0, 0, 0], sizes = [2, 8, 16], strides = [1, 1, 1]} : vector<2x8x192xf32> to vector<2x8x16xf32>
    %6 = vector.extract_strided_slice %4 {offsets = [0, 0, 64], sizes = [2, 8, 16], strides = [1, 1, 1]} : vector<2x8x192xf32> to vector<2x8x16xf32>
    %7 = vector.extract_strided_slice %4 {offsets = [0, 0, 128], sizes = [2, 8, 16], strides = [1, 1, 1]} : vector<2x8x192xf32> to vector<2x8x16xf32>
    "tpu.trace_start"() <{level = 10 : i32, message = "bqd,bkd->bqk"}> : () -> ()
    %cst_4 = arith.constant dense<0.000000e+00> : vector<2x8x8xf32>
    %8 = tpu.matmul %5, %6, %cst_4 {dimension_numbers = #tpu.dot_dimension_numbers<[2], [2], [1], [1], [0, 0, 0, 1, 1, 1], [0], [0]>} : vector<2x8x16xf32>, vector<2x8x16xf32>, vector<2x8x8xf32> -> vector<2x8x8xf32>
    "tpu.trace_stop"() : () -> ()
    %cst_5 = arith.constant dense<0xFF800000> : vector<2x8xf32>
    %9 = vector.multi_reduction <maximumf>, %8, %cst_5 [2] : vector<2x8x8xf32> to vector<2x8xf32>
    %10 = vector.shape_cast %9 : vector<2x8xf32> to vector<2x8x1xf32>
    %11 = vector.broadcast %10 : vector<2x8x1xf32> to vector<2x8x8xf32>
    %12 = arith.subf %8, %11 : vector<2x8x8xf32>
    %13 = math.exp %12 : vector<2x8x8xf32>
    %cst_6 = arith.constant dense<0.000000e+00> : vector<2x8xf32>
    %14 = vector.multi_reduction <add>, %13, %cst_6 [2] : vector<2x8x8xf32> to vector<2x8xf32>
    %15 = vector.shape_cast %14 : vector<2x8xf32> to vector<2x8x1xf32>
    %16 = vector.broadcast %15 : vector<2x8x1xf32> to vector<2x8x8xf32>
    %17 = arith.divf %13, %16 : vector<2x8x8xf32>
    "tpu.trace_start"() <{level = 10 : i32, message = "bqk,bkd->bqd"}> : () -> ()
    %cst_7 = arith.constant dense<0.000000e+00> : vector<2x8x16xf32>
    %18 = tpu.matmul %17, %7, %cst_7 {dimension_numbers = #tpu.dot_dimension_numbers<[2], [1], [1], [2], [0, 0, 0, 1, 1, 2], [0], [0]>} : vector<2x8x8xf32>, vector<2x8x16xf32>, vector<2x8x16xf32> -> vector<2x8x16xf32>
    "tpu.trace_stop"() : () -> ()
    %19 = vector.extract_strided_slice %4 {offsets = [0, 0, 16], sizes = [2, 8, 16], strides = [1, 1, 1]} : vector<2x8x192xf32> to vector<2x8x16xf32>
    %20 = vector.extract_strided_slice %4 {offsets = [0, 0, 80], sizes = [2, 8, 16], strides = [1, 1, 1]} : vector<2x8x192xf32> to vector<2x8x16xf32>
    %21 = vector.extract_strided_slice %4 {offsets = [0, 0, 144], sizes = [2, 8, 16], strides = [1, 1, 1]} : vector<2x8x192xf32> to vector<2x8x16xf32>
    "tpu.trace_start"() <{level = 10 : i32, message = "bqd,bkd->bqk"}> : () -> ()
    %cst_8 = arith.constant dense<0.000000e+00> : vector<2x8x8xf32>
    %22 = tpu.matmul %19, %20, %cst_8 {dimension_numbers = #tpu.dot_dimension_numbers<[2], [2], [1], [1], [0, 0, 0, 1, 1, 1], [0], [0]>} : vector<2x8x16xf32>, vector<2x8x16xf32>, vector<2x8x8xf32> -> vector<2x8x8xf32>
    "tpu.trace_stop"() : () -> ()
    %cst_9 = arith.constant dense<0xFF800000> : vector<2x8xf32>
    %23 = vector.multi_reduction <maximumf>, %22, %cst_9 [2] : vector<2x8x8xf32> to vector<2x8xf32>
    %24 = vector.shape_cast %23 : vector<2x8xf32> to vector<2x8x1xf32>
    %25 = vector.broadcast %24 : vector<2x8x1xf32> to vector<2x8x8xf32>
    %26 = arith.subf %22, %25 : vector<2x8x8xf32>
    %27 = math.exp %26 : vector<2x8x8xf32>
    %cst_10 = arith.constant dense<0.000000e+00> : vector<2x8xf32>
    %28 = vector.multi_reduction <add>, %27, %cst_10 [2] : vector<2x8x8xf32> to vector<2x8xf32>
    %29 = vector.shape_cast %28 : vector<2x8xf32> to vector<2x8x1xf32>
    %30 = vector.broadcast %29 : vector<2x8x1xf32> to vector<2x8x8xf32>
    %31 = arith.divf %27, %30 : vector<2x8x8xf32>
    "tpu.trace_start"() <{level = 10 : i32, message = "bqk,bkd->bqd"}> : () -> ()
    %cst_11 = arith.constant dense<0.000000e+00> : vector<2x8x16xf32>
    %32 = tpu.matmul %31, %21, %cst_11 {dimension_numbers = #tpu.dot_dimension_numbers<[2], [1], [1], [2], [0, 0, 0, 1, 1, 2], [0], [0]>} : vector<2x8x8xf32>, vector<2x8x16xf32>, vector<2x8x16xf32> -> vector<2x8x16xf32>
    "tpu.trace_stop"() : () -> ()
    %33 = vector.extract_strided_slice %4 {offsets = [0, 0, 32], sizes = [2, 8, 16], strides = [1, 1, 1]} : vector<2x8x192xf32> to vector<2x8x16xf32>
    %34 = vector.extract_strided_slice %4 {offsets = [0, 0, 96], sizes = [2, 8, 16], strides = [1, 1, 1]} : vector<2x8x192xf32> to vector<2x8x16xf32>
    %35 = vector.extract_strided_slice %4 {offsets = [0, 0, 160], sizes = [2, 8, 16], strides = [1, 1, 1]} : vector<2x8x192xf32> to vector<2x8x16xf32>
    "tpu.trace_start"() <{level = 10 : i32, message = "bqd,bkd->bqk"}> : () -> ()
    %cst_12 = arith.constant dense<0.000000e+00> : vector<2x8x8xf32>
    %36 = tpu.matmul %33, %34, %cst_12 {dimension_numbers = #tpu.dot_dimension_numbers<[2], [2], [1], [1], [0, 0, 0, 1, 1, 1], [0], [0]>} : vector<2x8x16xf32>, vector<2x8x16xf32>, vector<2x8x8xf32> -> vector<2x8x8xf32>
    "tpu.trace_stop"() : () -> ()
    %cst_13 = arith.constant dense<0xFF800000> : vector<2x8xf32>
    %37 = vector.multi_reduction <maximumf>, %36, %cst_13 [2] : vector<2x8x8xf32> to vector<2x8xf32>
    %38 = vector.shape_cast %37 : vector<2x8xf32> to vector<2x8x1xf32>
    %39 = vector.broadcast %38 : vector<2x8x1xf32> to vector<2x8x8xf32>
    %40 = arith.subf %36, %39 : vector<2x8x8xf32>
    %41 = math.exp %40 : vector<2x8x8xf32>
    %cst_14 = arith.constant dense<0.000000e+00> : vector<2x8xf32>
    %42 = vector.multi_reduction <add>, %41, %cst_14 [2] : vector<2x8x8xf32> to vector<2x8xf32>
    %43 = vector.shape_cast %42 : vector<2x8xf32> to vector<2x8x1xf32>
    %44 = vector.broadcast %43 : vector<2x8x1xf32> to vector<2x8x8xf32>
    %45 = arith.divf %41, %44 : vector<2x8x8xf32>
    "tpu.trace_start"() <{level = 10 : i32, message = "bqk,bkd->bqd"}> : () -> ()
    %cst_15 = arith.constant dense<0.000000e+00> : vector<2x8x16xf32>
    %46 = tpu.matmul %45, %35, %cst_15 {dimension_numbers = #tpu.dot_dimension_numbers<[2], [1], [1], [2], [0, 0, 0, 1, 1, 2], [0], [0]>} : vector<2x8x8xf32>, vector<2x8x16xf32>, vector<2x8x16xf32> -> vector<2x8x16xf32>
    "tpu.trace_stop"() : () -> ()
    %47 = vector.extract_strided_slice %4 {offsets = [0, 0, 48], sizes = [2, 8, 16], strides = [1, 1, 1]} : vector<2x8x192xf32> to vector<2x8x16xf32>
    %48 = vector.extract_strided_slice %4 {offsets = [0, 0, 112], sizes = [2, 8, 16], strides = [1, 1, 1]} : vector<2x8x192xf32> to vector<2x8x16xf32>
    %49 = vector.extract_strided_slice %4 {offsets = [0, 0, 176], sizes = [2, 8, 16], strides = [1, 1, 1]} : vector<2x8x192xf32> to vector<2x8x16xf32>
    "tpu.trace_start"() <{level = 10 : i32, message = "bqd,bkd->bqk"}> : () -> ()
    %cst_16 = arith.constant dense<0.000000e+00> : vector<2x8x8xf32>
    %50 = tpu.matmul %47, %48, %cst_16 {dimension_numbers = #tpu.dot_dimension_numbers<[2], [2], [1], [1], [0, 0, 0, 1, 1, 1], [0], [0]>} : vector<2x8x16xf32>, vector<2x8x16xf32>, vector<2x8x8xf32> -> vector<2x8x8xf32>
    "tpu.trace_stop"() : () -> ()
    %cst_17 = arith.constant dense<0xFF800000> : vector<2x8xf32>
    %51 = vector.multi_reduction <maximumf>, %50, %cst_17 [2] : vector<2x8x8xf32> to vector<2x8xf32>
    %52 = vector.shape_cast %51 : vector<2x8xf32> to vector<2x8x1xf32>
    %53 = vector.broadcast %52 : vector<2x8x1xf32> to vector<2x8x8xf32>
    %54 = arith.subf %50, %53 : vector<2x8x8xf32>
    %55 = math.exp %54 : vector<2x8x8xf32>
    %cst_18 = arith.constant dense<0.000000e+00> : vector<2x8xf32>
    %56 = vector.multi_reduction <add>, %55, %cst_18 [2] : vector<2x8x8xf32> to vector<2x8xf32>
    %57 = vector.shape_cast %56 : vector<2x8xf32> to vector<2x8x1xf32>
    %58 = vector.broadcast %57 : vector<2x8x1xf32> to vector<2x8x8xf32>
    %59 = arith.divf %55, %58 : vector<2x8x8xf32>
    "tpu.trace_start"() <{level = 10 : i32, message = "bqk,bkd->bqd"}> : () -> ()
    %cst_19 = arith.constant dense<0.000000e+00> : vector<2x8x16xf32>
    %60 = tpu.matmul %59, %49, %cst_19 {dimension_numbers = #tpu.dot_dimension_numbers<[2], [1], [1], [2], [0, 0, 0, 1, 1, 2], [0], [0]>} : vector<2x8x8xf32>, vector<2x8x16xf32>, vector<2x8x16xf32> -> vector<2x8x16xf32>
    "tpu.trace_stop"() : () -> ()
    %61 = tpu.concatenate %18, %32, %46, %60 in 2 : vector<2x8x16xf32>, vector<2x8x16xf32>, vector<2x8x16xf32>, vector<2x8x16xf32> -> vector<2x8x64xf32>
    %62 = vector.shape_cast %61 : vector<2x8x64xf32> to vector<16x64xf32>
    %c0_20 = arith.constant 0 : index
    %c0_21 = arith.constant 0 : index
    %63 = vector.load %arg3[%c0_20, %c0_21] : memref<64x32xf32, #tpu.memory_space<vmem>>, vector<64x32xf32>
    %cst_22 = arith.constant dense<0.000000e+00> : vector<16x32xf32>
    %64 = tpu.matmul %62, %63, %cst_22 {dimension_numbers = #tpu.dot_dimension_numbers<[1], [0], [0], [1], [0, 0, 1, 1], [], []>} : vector<16x64xf32>, vector<64x32xf32>, vector<16x32xf32> -> vector<16x32xf32>
    %c0_23 = arith.constant 0 : index
    %c0_24 = arith.constant 0 : index
    %65 = vector.load %arg4[%c0_23, %c0_24] : memref<1x32xf32, #tpu.memory_space<vmem>>, vector<1x32xf32>
    %66 = vector.broadcast %65 : vector<1x32xf32> to vector<16x32xf32>
    %67 = arith.addf %64, %66 : vector<16x32xf32>
    %68 = math.tanh %67 : vector<16x32xf32>
    %c0_25 = arith.constant 0 : index
    %c0_26 = arith.constant 0 : index
    %69 = vector.load %arg5[%c0_25, %c0_26] : memref<1x32xf32, #tpu.memory_space<vmem>>, vector<1x32xf32>
    %70 = vector.broadcast %69 : vector<1x32xf32> to vector<16x32xf32>
    %71 = arith.mulf %68, %70 : vector<16x32xf32>
    %cst_27 = arith.constant dense<0.000000e+00> : vector<16xf32>
    %72 = vector.multi_reduction <add>, %71, %cst_27 [1] : vector<16x32xf32> to vector<16xf32>
    %73 = vector.shape_cast %72 : vector<16xf32> to vector<16x1xf32>
    %74 = vector.shape_cast %73 : vector<16x1xf32> to vector<2x8x1xf32>
    %cst_28 = arith.constant dense<0xFF800000> : vector<2x1xf32>
    %75 = vector.multi_reduction <maximumf>, %74, %cst_28 [1] : vector<2x8x1xf32> to vector<2x1xf32>
    %76 = vector.shape_cast %75 : vector<2x1xf32> to vector<2x1x1xf32>
    %77 = vector.broadcast %76 : vector<2x1x1xf32> to vector<2x8x1xf32>
    %78 = arith.subf %74, %77 : vector<2x8x1xf32>
    %79 = math.exp %78 : vector<2x8x1xf32>
    %cst_29 = arith.constant dense<0.000000e+00> : vector<2x1xf32>
    %80 = vector.multi_reduction <add>, %79, %cst_29 [1] : vector<2x8x1xf32> to vector<2x1xf32>
    %81 = vector.shape_cast %80 : vector<2x1xf32> to vector<2x1x1xf32>
    %82 = vector.broadcast %81 : vector<2x1x1xf32> to vector<2x8x1xf32>
    %83 = arith.divf %79, %82 : vector<2x8x1xf32>
    %84 = vector.broadcast %83 : vector<2x8x1xf32> to vector<2x8x64xf32>
    %85 = arith.mulf %84, %61 : vector<2x8x64xf32>
    %cst_30 = arith.constant dense<0.000000e+00> : vector<2x64xf32>
    %86 = vector.multi_reduction <add>, %85, %cst_30 [1] : vector<2x8x64xf32> to vector<2x64xf32>
    %c0_31 = arith.constant 0 : index
    %c0_32 = arith.constant 0 : index
    %87 = vector.load %arg6[%c0_31, %c0_32] : memref<2x64xf32, #tpu.memory_space<vmem>>, vector<2x64xf32>
    tpu.vector_store %arg6[%c0_31, %c0_32], %86 {strides = array<i32>} : memref<2x64xf32, #tpu.memory_space<vmem>>, vector<2x64xf32>,
    return
  }
  func.func @transform_0(%arg0: i32) -> (i32, i32, i32) {
    %c0_i32 = arith.constant 0 : i32
    %c0_i32_0 = arith.constant 0 : i32
    %c0_i32_1 = arith.constant 0 : i32
    return %arg0, %c0_i32, %c0_i32_0 : i32, i32, i32
  }
  func.func @transform_1(%arg0: i32) -> (i32, i32) {
    %c0_i32 = arith.constant 0 : i32
    %c0_i32_0 = arith.constant 0 : i32
    %c0_i32_1 = arith.constant 0 : i32
    return %c0_i32, %c0_i32_0 : i32, i32
  }
  func.func @transform_2(%arg0: i32) -> (i32, i32) {
    %c0_i32 = arith.constant 0 : i32
    %c0_i32_0 = arith.constant 0 : i32
    %c0_i32_1 = arith.constant 0 : i32
    return %c0_i32, %c0_i32_0 : i32, i32
  }
  func.func @transform_3(%arg0: i32) -> (i32, i32) {
    %c0_i32 = arith.constant 0 : i32
    %c0_i32_0 = arith.constant 0 : i32
    %c0_i32_1 = arith.constant 0 : i32
    return %c0_i32, %c0_i32_0 : i32, i32
  }
  func.func @transform_4(%arg0: i32) -> (i32, i32) {
    %c0_i32 = arith.constant 0 : i32
    %c0_i32_0 = arith.constant 0 : i32
    %c0_i32_1 = arith.constant 0 : i32
    return %c0_i32, %c0_i32_0 : i32, i32
  }
  func.func @transform_5(%arg0: i32) -> (i32, i32) {
    %c0_i32 = arith.constant 0 : i32
    %c0_i32_0 = arith.constant 0 : i32
    return %arg0, %c0_i32 : i32, i32
  }
}

</mosaic_0001>

<bundles_post_ra>
// kernel: user_encoder.1
= control target key start
LH: loop header
LB: loop body
LE: loop exit
PB: predicated region body
PF: predicated region fallthrough
CT: control target
= control target key end

     0   :  { %10 = vsyncpa [#allocation3], 0  ;;  %s1306_s0 = inlined_call_operand.vmem [shape: f32[2,8,64], index: 0, kind: input, shape index: {}]   ;;  %s1307_s1 = inlined_call_operand.hbm [shape: f32[64,192], index: 1, kind: input, shape index: {}]   ;;  %s1308_s2 = inlined_call_operand.vmem [shape: f32[64,32], index: 2, kind: input, shape index: {}]   ;;  %s1309_s3 = inlined_call_operand.vmem [shape: f32[1,32], index: 3, kind: input, shape index: {}]   ;;  %s1310_s4 = inlined_call_operand.vmem [shape: f32[1,32], index: 4, kind: input, shape index: {}]   ;;  %s1311_s5 = inlined_call_operand.hbm [shape: f32[2,64], index: 5, kind: output, shape index: {}]  }
   0x1   :  { %11 = vsyncpa [#allocation4], 0  ;;  %s18_s20 = sshll.u32 %s1307_s1, 4  ;;  %s1058_s21 = smov [#allocation2]   ;;  %s19_s20 = int_to_ptr.hbm [resolvable:$true] %s18_s20 }
   0x2   :  { %s20_s22 = sshll.u32 %s1058_s21, 4  ;;  %s1059_s23 = smov 256   ;;  %s21_s22 = int_to_ptr.vmem [resolvable:$true] %s20_s22 }
   0x3   :  { %s1060_s24 = smov 16  }
   0x4   :  { %26 = dma.hbm_to_vmem [thread:$0]  %s19_s20, 2048, %s21_s22, [#allocation3], %s1059_s23, %s1059_s23, %s1060_s24  }
   0x5   :  { %1054 = dma.done.wait [#allocation3], 2048  }
   0x6   :  { %1055 = vsyncadd [#allocation3], 4294965248  ;;  %v53_v0 = vld [vmem:[#allocation2 + $0x70] sm:$0xff]  ;;  %v51_v1 = vld [vmem:[#allocation2 + $0x60] sm:$0xff]  ;;  %vm55_vm0 = vcmask 523264   ;;  %s1061_s28 = smov 32  }
   0x7   :  { %70 = vmatpush.msra.mxu1 %v53_v0  ;;  %v49_v2 = vld [vmem:[#allocation2 + $0x50] sm:$0xff]  ;;  %v47_v3 = vld [vmem:[#allocation2 + $0x40] sm:$0xff]  ;;  %v54_v9 = vld [vmem:[#allocation2 + $0x78] sm:$0xff]  ;;  %s1063_s29 = smov 48   ;;  %s1064_s30 = smov 96   ;;  %vm111_vm1 = vcmask 130048  }
   0x8   :  { %v45_v4 = vld [vmem:[#allocation2 + $0x30] sm:$0xff]  ;;  %v43_v5 = vld [vmem:[#allocation2 + $0x20] sm:$0xff]  ;;  %v52_v10 = vld [vmem:[#allocation2 + $0x68] sm:$0xff]  ;;  %s1065_s6 = smov 112   ;;  %s1066_s7 = smov 80   ;;  %vm163_vm2 = vcmask 64512  }
   0x9   :  { %71 = vmatpush.msra.mxu1 %v51_v1  ;;  %v41_v6 = vld [vmem:[#allocation2 + $0x10] sm:$0xff]  ;;  %v39_v7 = vld [vmem:[#allocation2] sm:$0xff]  ;;  %v50_v11 = vld [vmem:[#allocation2 + $0x58] sm:$0xff] }
   0xa   :  { %v37_v8 = vld [vmem:[%s1306_s0] sm:$0xff]  ;;  %v48_v12 = vld [vmem:[#allocation2 + $0x48] sm:$0xff]  ;;  %v46_v14 = vld [vmem:[#allocation2 + $0x38] sm:$0xff] }
   0xb   :  { %72 = vmatpush.msra.mxu1 %v49_v2  ;;  %v38_v13 = vld [vmem:[%s1306_s0 + $0x8] sm:$0xff]  ;;  %v42_v16 = vld [vmem:[#allocation2 + $0x18] sm:$0xff]  ;;  %s1062_s0 = smov 64  }
   0xc   :  { %v44_v15 = vld [vmem:[#allocation2 + $0x28] sm:$0xff] }
   0xd   :  { %73 = vmatpush.msra.mxu1 %v47_v3  ;;  %v40_v17 = vld [vmem:[#allocation2 + $0x8] sm:$0xff] }
   0xf   :  { %74 = vmatpush.msra.mxu1 %v45_v4 }
  0x11   :  { %75 = vmatpush.msra.mxu1 %v43_v5 }
  0x13   :  { %76 = vmatpush.msra.mxu1 %v41_v6 }
  0x15   :  { %77 = vmatpush.msra.mxu1 %v39_v7 }
  0x16   :  { %915 = vmatmul.msk.f32.vlgmr.msra.gmra.mxu1 %vm55_vm0, %v37_v8 }
  0x17   :  { %93 = vmatpush.msrb.mxu1 %v54_v9 }
  0x19   :  { %94 = vmatpush.msrb.mxu1 %v52_v10 }
  0x1b   :  { %95 = vmatpush.msrb.mxu1 %v50_v11 }
  0x1d   :  { %96 = vmatpush.msrb.mxu1 %v48_v12 }
  0x1e   :  { %916 = vmatmul.msk.f32.gmra.mxu1 %vm55_vm0, %v38_v13 }
  0x1f   :  { %97 = vmatpush.msrb.mxu1 %v46_v14 }
  0x21   :  { %98 = vmatpush.msrb.mxu1 %v44_v15 }
  0x23   :  { %99 = vmatpush.msrb.mxu1 %v42_v16 }
  0x25   :  { %100 = vmatpush.msrb.mxu1 %v40_v17 }
  0x26   :  { %917 = vmatmul.msk.f32.vlgmr.msrb.gmra.mxu1 %vm55_vm0, %v37_v8 }
  0x2e   :  { %918 = vmatmul.msk.f32.gmra.mxu1 %vm55_vm0, %v38_v13 }
  0x93   :  { %v1112_v18 = vpop.f32.mrf.mxu1 }
  0x94   :  { %418 = vrot.lane.b32.xlu2 %v1112_v18, %s1061_s28  ;;  %109 = vrot.lane.b32.xlu0 %v1112_v18, %s1062_s0 }
  0x9b   :  { %v82_v19 = vpop.f32.mrf.mxu1 }
  0x9c   :  { %137 = vrot.lane.b32.xlu0 %v82_v19, %s1062_s0 }
  0xa3   :  { %v1127_v21 = vpop.f32.mrf.mxu1 }
  0xa4   :  { %260 = vrot.lane.b32.xlu0 %v1112_v18, %s1063_s29 }
  0xab   :  { %v1133_v23 = vpop.f32.mrf.mxu1 }
  0xac   :  { %288 = vrot.lane.b32.xlu0 %v82_v19, %s1063_s29 }
  0xb4   :  { %416 = vrot.lane.b32.xlu0 %v1112_v18, %s1064_s30 }
  0xbc   :  { %286 = vrot.lane.b32.xlu0 %v82_v19, %s1065_s6 }
  0xc4   :  { %574 = vrot.lane.b32.xlu0 %v1112_v18, %s1060_s24 }
  0xcc   :  { %600 = vrot.lane.b32.xlu0 %v82_v19, %s1066_s7 }
  0xee   :  { %v419_v20 = vpop.permute.xlu2 %418 }
  0xef   :  { %931 = vmatpush.xpose.msk.msra.mxu0 %vm111_vm1, %v419_v20 }
 0x106   :  { %v110_v22 = vpop.permute.xlu0 %109 }
 0x107   :  { %919 = vmatpush.xpose.msk.msra.mxu2 %vm111_vm1, %v110_v22 }
 0x10a   :  { %920 = vmatmul.msk.f32.vlgmr.msra.gmra.mxu2 %vm111_vm1, %v1112_v18 }
 0x10b   :  { %230 = vmatpush.msrb.mxu2 %v1127_v21 }
 0x10e   :  { %v138_v24 = vpop.permute.xlu0 %137 }
 0x10f   :  { %921 = vmatpush.xpose.msk.msra.mxu3 %vm111_vm1, %v138_v24 }
 0x112   :  { %922 = vmatmul.msk.f32.vlgmr.msra.gmra.mxu3 %vm111_vm1, %v82_v19 }
 0x113   :  { %253 = vmatpush.msrb.mxu3 %v1133_v23 }
 0x116   :  { %v261_v25 = vpop.permute.xlu0 %260 }
 0x117   :  { %925 = vmatpush.xpose.msk.msra.mxu2 %vm111_vm1, %v261_v25 }
 0x11e   :  { %v289_v26 = vpop.permute.xlu0 %288 }
 0x11f   :  { %927 = vmatpush.xpose.msk.msra.mxu3 %vm111_vm1, %v289_v26 }
 0x126   :  { %v417_v27 = vpop.permute.xlu0 %416 }
 0x127   :  { %932 = vmatmul.msk.f32.vlgmr.msra.gmra.mxu0 %vm111_vm1, %v417_v27 }
 0x12e   :  { %v287_v44 = vpop.permute.xlu0 %286 }
 0x136   :  { %v575_v47 = vpop.permute.xlu0 %574 }
 0x13e   :  { %v601_v49 = vpop.permute.xlu0 %600 }
 0x18d   :  { %v133_v28 = vpop.f32.mrf.mxu2 }
 0x18e   :  { %v164_v29 = vsel %vm163_vm2, %v133_v28, -inf }
 0x18f   :  { %165 = vmax.xlane.f32.xlu1 %v164_v29 }
 0x195   :  { %v160_v30 = vpop.f32.mrf.mxu3 }
 0x196   :  { %v167_v31 = vsel %vm163_vm2, %v160_v30, -inf }
 0x197   :  { %168 = vmax.xlane.f32.xlu1 %v167_v31 }
 0x1a4   :  { %v1143_v32 = vpop.f32.mrf.mxu0 }
 0x1a5   :  { %v472_v33 = vsel %vm163_vm2, %v1143_v32, -inf }
 0x1a6   :  { %473 = vmax.xlane.f32.xlu0 %v472_v33 }
 0x1b0   :  { %258 = vrot.lane.b32.xlu1 %v1112_v18, %s1065_s6 }
 0x1b8   :  { %444 = vrot.lane.b32.xlu1 %v82_v19, %s1064_s30 }
 0x1c0   :  { %602 = vrot.lane.b32.xlu1 %v82_v19, %s1060_s24 }
 0x202   :  { %v166_v34 = vpop.xlane.xlu1 %165 }
 0x203   :  { %v170_v35 = vsub.f32 %v133_v28, %v166_v34  ;;  %v955_v28 = vpack.i.bf16 %v1133_v23, %v1127_v21 }
 0x205   :  { %v172_v36 = vmul.f32 1.442695, %v170_v35 }
 0x207   :  { %962 = vpow2.f32 %v172_v36 }
 0x20a   :  { %v169_v37 = vpop.xlane.xlu1 %168 }
 0x20b   :  { %v171_v38 = vsub.f32 %v160_v30, %v169_v37 }
 0x20d   :  { %v963_v39 = vpop.eup %962  ;;  %v174_v40 = vmul.f32 1.442695, %v171_v38 }
 0x20e   :  { %v176_v41 = vsel %vm163_vm2, %v963_v39, 0.0 }
 0x20f   :  { %964 = vpow2.f32 %v174_v40  ;;  %177 = vadd.xlane.f32.xlu2 %v176_v41 }
 0x215   :  { %v965_v42 = vpop.eup %964 }
 0x216   :  { %v179_v43 = vsel %vm163_vm2, %v965_v42, 0.0 }
 0x217   :  { %180 = vadd.xlane.f32.xlu2 %v179_v43 }
 0x222   :  { %v259_v45 = vpop.permute.xlu1 %258 }
 0x22a   :  { %v445_v46 = vpop.permute.xlu1 %444 }
 0x22f   :  { %446 = vrot.lane.b32.xlu2 %v82_v19, %s1061_s28 }
 0x232   :  { %v603_v48 = vpop.permute.xlu1 %602 }
 0x233   :  { %939 = vmatpush.xpose.msk.msra.mxu1 %vm111_vm1, %v603_v48 }
 0x236   :  { %940 = vmatmul.msk.f32.vlgmr.msra.gmra.mxu1 %vm111_vm1, %v601_v49 }
 0x237   :  { %572 = vrot.lane.b32.xlu2 %v1112_v18, %s1066_s7  ;;  %v474_v18 = vpop.xlane.xlu0 %473 }
 0x238   :  { %v478_v19 = vsub.f32 %v1143_v32, %v474_v18 }
 0x23a   :  { %v480_v22 = vmul.f32 1.442695, %v478_v19 }
 0x282   :  { %v178_v50 = vpop.xlane.xlu2 %177 }
 0x283   :  { %966 = vrcp.f32 %v178_v50  ;;  %v193_v55 = vand.u32 2147483648, %v178_v50  ;;  %v191_v57 = vand.u32 2147483647, %v178_v50  ;;  %vm187_vm4 = vweird.f32 %v178_v50 }
 0x285   :  { %v194_v60 = vor.u32 1.1754944e-38, %v193_v55  ;;  %vm192_vm6 = vcmp.eq.f32.partialorder %v191_v57, 8.507059e+37 }
 0x289   :  { %v967_v51 = vpop.eup %966 }
 0x28a   :  { %v183_v52 = vmul.f32 %v967_v51, %v178_v50  ;;  %v181_v53 = vpop.xlane.xlu2 %180  ;;  %vm188_vm3 = vweird.f32 %v967_v51 }
 0x28b   :  { %968 = vrcp.f32 %v181_v53  ;;  %vm189_vm5 = vmor %vm187_vm4, %vm188_vm3  ;;  %v208_v3 = vand.u32 2147483648, %v181_v53  ;;  %v206_v5 = vand.u32 2147483647, %v181_v53  ;;  %vm202_vm8 = vweird.f32 %v181_v53 }
 0x28c   :  { %v184_v54 = vsub.f32 1.0, %v183_v52  ;;  %970 = vpow2.f32 %v480_v22 }
 0x28d   :  { %v209_v7 = vor.u32 1.1754944e-38, %v208_v3  ;;  %vm207_vm10 = vcmp.eq.f32.partialorder %v206_v5, 8.507059e+37 }
 0x28e   :  { %v185_v56 = vmul.f32 %v967_v51, %v184_v54 }
 0x290   :  { %v186_v58 = vadd.f32 %v967_v51, %v185_v56 }
 0x291   :  { %v969_v59 = vpop.eup %968 }
 0x292   :  { %v198_v61 = vmul.f32 %v969_v59, %v181_v53  ;;  %v447_v62 = vpop.permute.xlu2 %446  ;;  %v190_v63 = vsel %vm189_vm5, %v967_v51, %v186_v58  ;;  %vm203_vm7 = vweird.f32 %v969_v59  ;;  %v1173_v26 = vpop.eup %970 }
 0x293   :  { %933 = vmatpush.xpose.msk.msrb.mxu0 %vm111_vm1, %v447_v62  ;;  %v195_v0 = vsel %vm192_vm6, %v194_v60, %v190_v63  ;;  %vm204_vm9 = vmor %vm202_vm8, %vm203_vm7  ;;  %v484_v27 = vsel %vm163_vm2, %v1173_v26, 0.0 }
 0x294   :  { %v199_v1 = vsub.f32 1.0, %v198_v61  ;;  %v196_v2 = vmul.f32 %v963_v39, %v195_v0 }
 0x296   :  { %v200_v4 = vmul.f32 %v969_v59, %v199_v1  ;;  %923 = vmatmul.msk.f32.vlgmr.msrb.gmra.mxu2 %vm163_vm2, %v196_v2  ;;  %934 = vmatmul.msk.f32.vlgmr.msrb.gmra.mxu0 %vm111_vm1, %v445_v46 }
 0x297   :  { %937 = vmatpush.xpose.msk.msra.mxu0 %vm111_vm1, %v575_v47 }
 0x298   :  { %v201_v6 = vadd.f32 %v969_v59, %v200_v4 }
 0x29a   :  { %v205_v8 = vsel %vm204_vm9, %v969_v59, %v201_v6  ;;  %v573_v11 = vpop.permute.xlu2 %572 }
 0x29b   :  { %v210_v9 = vsel %vm207_vm10, %v209_v7, %v205_v8 }
 0x29c   :  { %v211_v10 = vmul.f32 %v965_v42, %v210_v9 }
 0x29e   :  { %924 = vmatmul.msk.f32.vlgmr.msrb.gmra.mxu3 %vm163_vm2, %v211_v10  ;;  %926 = vmatmul.msk.f32.vlgmr.msra.gmra.mxu2 %vm111_vm1, %v259_v45 }
 0x29f   :  { %938 = vmatmul.msk.f32.vlgmr.msra.gmra.mxu0 %vm111_vm1, %v573_v11 }
 0x2a6   :  { %928 = vmatmul.msk.f32.vlgmr.msra.gmra.mxu3 %vm111_vm1, %v287_v44 }
 0x2b3   :  { %v625_v24 = vpop.f32.mrf.mxu1 }
 0x2b4   :  { %v631_v25 = vsel %vm163_vm2, %v625_v24, -inf }
 0x313   :  { %v469_v12 = vpop.f32.mrf.mxu0 }
 0x314   :  { %v475_v20 = vsel %vm163_vm2, %v469_v12, -inf }
 0x319   :  { %v1166_v13 = vpop.f32.mrf.mxu2 }
 0x31c   :  { %v597_v14 = vpop.f32.mrf.mxu0 }
 0x31d   :  { %v628_v15 = vsel %vm163_vm2, %v597_v14, -inf }
 0x31e   :  { %629 = vmax.xlane.f32.xlu1 %v628_v15 }
 0x321   :  { %v283_v16 = vpop.f32.mrf.mxu2  ;;  %v1182_v33 = vpop.f32.mrf.mxu3 }
 0x322   :  { %v314_v17 = vsel %vm163_vm2, %v283_v16, -inf }
 0x323   :  { %315 = vmax.xlane.f32.xlu2 %v314_v17 }
 0x329   :  { %v311_v39 = vpop.f32.mrf.mxu3 }
 0x32a   :  { %v317_v40 = vsel %vm163_vm2, %v311_v39, -inf }
 0x32b   :  { %476 = vmax.xlane.f32.xlu2 %v475_v20 }
 0x333   :  { %632 = vmax.xlane.f32.xlu2 %v631_v25 }
 0x33b   :  { %485 = vadd.xlane.f32.xlu2 %v484_v27 }
 0x353   :  { %956 = vrot.lane.b32.xlu2 %v955_v28, %s1065_s6 }
 0x35b   :  { %676 = vrot.lane.b32.xlu2 %v1127_v21, %s1066_s7 }
 0x391   :  { %v630_v29 = vpop.xlane.xlu1 %629 }
 0x392   :  { %v634_v30 = vsub.f32 %v597_v14, %v630_v29 }
 0x394   :  { %v636_v31 = vmul.f32 1.442695, %v634_v30 }
 0x396   :  { %972 = vpow2.f32 %v636_v31  ;;  %v316_v32 = vpop.xlane.xlu2 %315 }
 0x397   :  { %v320_v44 = vsub.f32 %v283_v16, %v316_v32 }
 0x399   :  { %v322_v47 = vmul.f32 1.442695, %v320_v44 }
 0x39c   :  { %v1184_v34 = vpop.eup %972 }
 0x39d   :  { %v640_v35 = vsel %vm163_vm2, %v1184_v34, 0.0 }
 0x39e   :  { %641 = vadd.xlane.f32.xlu1 %v640_v35  ;;  %v477_v36 = vpop.xlane.xlu2 %476 }
 0x39f   :  { %v479_v37 = vsub.f32 %v469_v12, %v477_v36 }
 0x3a1   :  { %v482_v38 = vmul.f32 1.442695, %v479_v37 }
 0x3a3   :  { %974 = vpow2.f32 %v482_v38 }
 0x3a6   :  { %318 = vmax.xlane.f32.xlu1 %v317_v40  ;;  %v633_v41 = vpop.xlane.xlu2 %632 }
 0x3a7   :  { %v635_v42 = vsub.f32 %v625_v24, %v633_v41 }
 0x3a9   :  { %v1189_v43 = vpop.eup %974  ;;  %v638_v45 = vmul.f32 1.442695, %v635_v42 }
 0x3aa   :  { %v487_v46 = vsel %vm163_vm2, %v1189_v43, 0.0 }
 0x3ab   :  { %976 = vpow2.f32 %v638_v45  ;;  %488 = vadd.xlane.f32.xlu0 %v487_v46 }
 0x3ac   :  { %978 = vpow2.f32 %v322_v47 }
 0x3ae   :  { %v1193_v48 = vpop.xlane.xlu2 %485 }
 0x3af   :  { %v501_v19 = vand.u32 2147483648, %v1193_v48  ;;  %vm495_vm3 = vweird.f32 %v1193_v48  ;;  %v499_v22 = vand.u32 2147483647, %v1193_v48 }
 0x3b1   :  { %v1195_v49 = vpop.eup %976  ;;  %v502_v30 = vor.u32 1.1754944e-38, %v501_v19  ;;  %vm500_vm5 = vcmp.eq.f32.partialorder %v499_v22, 8.507059e+37  ;;  %v761_v19 = vld [vmem:[%s1308_s2 + $0x8] sm:$0xff] }
 0x3b2   :  { %v643_v50 = vsel %vm163_vm2, %v1195_v49, 0.0  ;;  %v979_v52 = vpop.eup %978 }
 0x3b3   :  { %644 = vadd.xlane.f32.xlu0 %v643_v50  ;;  %v326_v55 = vsel %vm163_vm2, %v979_v52, 0.0 }
 0x3b6   :  { %v957_v51 = vpop.permute.xlu2 %956 }
 0x3b7   :  { %v959_v53 = vunpack.i.h.bf16 %v957_v51  ;;  %v958_v54 = vunpack.i.l.bf16 %v957_v51 }
 0x3b9   :  { %384 = vmatpush.msrb.mxu2 %v958_v54  ;;  %411 = vmatpush.msrb.mxu3 %v959_v53 }
 0x3bb   :  { %327 = vadd.xlane.f32.xlu0 %v326_v55 }
 0x3be   :  { %v677_v28 = vpop.permute.xlu2 %676 }
 0x3bf   :  { %520 = vrot.lane.b32.xlu1 %v1127_v21, %s1064_s30 }
 0x3cf   :  { %546 = vrot.lane.b32.xlu0 %v1133_v23, %s1064_s30 }
 0x411   :  { %v1204_v56 = vpop.xlane.xlu1 %641 }
 0x412   :  { %vm651_vm7 = vweird.f32 %v1204_v56  ;;  %v655_v35 = vand.u32 2147483647, %v1204_v56 }
 0x414   :  { %vm656_vm9 = vcmp.eq.f32.partialorder %v655_v35, 8.507059e+37 }
 0x419   :  { %v319_v57 = vpop.xlane.xlu1 %318 }
 0x41a   :  { %v321_v58 = vsub.f32 %v311_v39, %v319_v57 }
 0x41c   :  { %v324_v59 = vmul.f32 1.442695, %v321_v58 }
 0x41e   :  { %980 = vpow2.f32 %v324_v59  ;;  %v1206_v60 = vpop.xlane.xlu0 %488 }
 0x41f   :  { %982 = vrcp.f32 %v1193_v48  ;;  %v516_v59 = vand.u32 2147483648, %v1206_v60 }
 0x424   :  { %v1208_v61 = vpop.eup %980 }
 0x425   :  { %v329_v62 = vsel %vm163_vm2, %v1208_v61, 0.0  ;;  %v983_v21 = vpop.eup %982 }
 0x426   :  { %330 = vadd.xlane.f32.xlu1 %v329_v62  ;;  %v1212_v63 = vpop.xlane.xlu0 %644  ;;  %v491_v1 = vmul.f32 %v983_v21, %v1193_v48  ;;  %vm496_vm13 = vweird.f32 %v983_v21 }
 0x427   :  { %vm497_vm4 = vmor %vm495_vm3, %vm496_vm13 }
 0x428   :  { %v492_v4 = vsub.f32 1.0, %v491_v1 }
 0x42a   :  { %v493_v8 = vmul.f32 %v983_v21, %v492_v4 }
 0x42c   :  { %v494_v16 = vadd.f32 %v983_v21, %v493_v8 }
 0x42e   :  { %v328_v0 = vpop.xlane.xlu0 %327  ;;  %v498_v27 = vsel %vm497_vm4, %v983_v21, %v494_v16  ;;  %v514_v21 = vand.u32 2147483647, %v1206_v60  ;;  %v764_v16 = vld [vmem:[%s1308_s2 + $0x20] sm:$0xff] }
 0x42f   :  { %984 = vrcp.f32 %v328_v0  ;;  %v343_v9 = vand.u32 2147483648, %v328_v0  ;;  %v341_v12 = vand.u32 2147483647, %v328_v0  ;;  %vm337_vm12 = vweird.f32 %v328_v0 }
 0x430   :  { %986 = vrcp.f32 %v1204_v56  ;;  %v503_v31 = vsel %vm500_vm5, %v502_v30, %v498_v27  ;;  %vm515_vm4 = vcmp.eq.f32.partialorder %v514_v21, 8.507059e+37 }
 0x431   :  { %v521_v2 = vpop.permute.xlu1 %520  ;;  %v344_v15 = vor.u32 1.1754944e-38, %v343_v9  ;;  %vm342_vm15 = vcmp.eq.f32.partialorder %v341_v12, 8.507059e+37  ;;  %v504_v36 = vmul.f32 %v1173_v26, %v503_v31  ;;  %988 = vrcp.f32 %v1206_v60 }
 0x432   :  { %541 = vmatpush.msra.mxu2 %v521_v2 }
 0x435   :  { %v985_v3 = vpop.eup %984 }
 0x436   :  { %v333_v5 = vmul.f32 %v985_v3, %v328_v0  ;;  %v987_v6 = vpop.eup %986  ;;  %vm338_vm11 = vweird.f32 %v985_v3 }
 0x437   :  { %v647_v10 = vmul.f32 %v987_v6, %v1204_v56  ;;  %vm339_vm14 = vmor %vm337_vm12, %vm338_vm11  ;;  %vm652_vm6 = vweird.f32 %v987_v6  ;;  %v989_v41 = vpop.eup %988 }
 0x438   :  { %v334_v7 = vsub.f32 1.0, %v333_v5  ;;  %vm653_vm8 = vmor %vm651_vm7, %vm652_vm6  ;;  %v506_v44 = vmul.f32 %v989_v41, %v1206_v60  ;;  %vm511_vm12 = vweird.f32 %v989_v41  ;;  %vm666_vm6 = vweird.f32 %v1212_v63 }
 0x439   :  { %v648_v17 = vsub.f32 1.0, %v647_v10 }
 0x43a   :  { %v335_v11 = vmul.f32 %v985_v3, %v334_v7  ;;  %v507_v45 = vsub.f32 1.0, %v506_v44  ;;  %v672_v7 = vand.u32 2147483648, %v1212_v63 }
 0x43b   :  { %v649_v29 = vmul.f32 %v987_v6, %v648_v17  ;;  %v763_v17 = vld [vmem:[%s1308_s2 + $0x18] sm:$0xff] }
 0x43c   :  { %v336_v14 = vadd.f32 %v985_v3, %v335_v11  ;;  %v508_v50 = vmul.f32 %v989_v41, %v507_v45  ;;  %v673_v9 = vor.u32 1.1754944e-38, %v672_v7 }
 0x43d   :  { %v650_v32 = vadd.f32 %v987_v6, %v649_v29 }
 0x43e   :  { %v340_v18 = vsel %vm339_vm14, %v985_v3, %v336_v14  ;;  %v517_v3 = vor.u32 1.1754944e-38, %v516_v59 }
 0x43f   :  { %v345_v20 = vsel %vm342_vm15, %v344_v15, %v340_v18  ;;  %702 = vrot.lane.b32.xlu1 %v1133_v23, %s1066_s7  ;;  %v657_v23 = vand.u32 2147483648, %v1204_v56  ;;  %v654_v37 = vsel %vm653_vm8, %v987_v6, %v650_v32  ;;  %v509_v56 = vadd.f32 %v989_v41, %v508_v50  ;;  %v766_v15 = vld [vmem:[%s1308_s2 + $0x30] sm:$0xff] }
 0x440   :  { %v346_v24 = vmul.f32 %v979_v52, %v345_v20  ;;  %vm510_vm15 = vweird.f32 %v1206_v60  ;;  %v670_v60 = vand.u32 2147483647, %v1212_v63  ;;  %v762_v18 = vld [vmem:[%s1308_s2 + $0x10] sm:$0xff]  ;;  %v760_v20 = vld [vmem:[%s1308_s2] sm:$0xff] }
 0x441   :  { %v547_v25 = vpop.permute.xlu0 %546  ;;  %v658_v38 = vor.u32 1.1754944e-38, %v657_v23  ;;  %vm512_vm3 = vmor %vm510_vm15, %vm511_vm12 }
 0x442   :  { %929 = vmatmul.msk.f32.vlgmr.msrb.gmra.mxu2 %vm163_vm2, %v346_v24  ;;  %567 = vmatpush.msra.mxu3 %v547_v25  ;;  %v513_v1 = vsel %vm512_vm3, %v989_v41, %v509_v56  ;;  %vm671_vm8 = vcmp.eq.f32.partialorder %v670_v60, 8.507059e+37 }
 0x443   :  { %697 = vmatpush.msrb.mxu2 %v677_v28  ;;  %v659_v39 = vsel %vm656_vm9, %v658_v38, %v654_v37  ;;  %v518_v4 = vsel %vm515_vm4, %v517_v3, %v513_v1  ;;  %vm757_vm9 = vcmask 392192   ;;  %vm893_vm4 = vcmask 1041409  }
 0x444   :  { %v660_v40 = vmul.f32 %v1184_v34, %v659_v39  ;;  %v960_v39 = vld [vmem:[%s1309_s3] ss:$0 sm:$0xff]  ;;  %s1067_s3 = smov [#allocation5]  }
 0x44a   :  { %935 = vmatmul.msk.f32.vlgmr.msra.gmra.mxu2 %vm163_vm2, %v504_v36 }
 0x452   :  { %941 = vmatmul.msk.f32.vlgmr.msrb.gmra.mxu2 %vm163_vm2, %v660_v40 }
 0x499   :  { %v331_v42 = vpop.xlane.xlu1 %330 }
 0x49a   :  { %990 = vrcp.f32 %v331_v42  ;;  %v358_v51 = vand.u32 2147483648, %v331_v42  ;;  %v356_v53 = vand.u32 2147483647, %v331_v42  ;;  %vm352_vm11 = vweird.f32 %v331_v42 }
 0x49b   :  { %992 = vrcp.f32 %v1212_v63 }
 0x49c   :  { %v359_v55 = vor.u32 1.1754944e-38, %v358_v51  ;;  %vm357_vm14 = vcmp.eq.f32.partialorder %v356_v53, 8.507059e+37 }
 0x4a0   :  { %v991_v26 = vpop.eup %990 }
 0x4a1   :  { %v348_v46 = vmul.f32 %v991_v26, %v331_v42  ;;  %v993_v47 = vpop.eup %992  ;;  %vm353_vm10 = vweird.f32 %v991_v26 }
 0x4a2   :  { %v662_v34 = vmul.f32 %v993_v47, %v1212_v63  ;;  %vm354_vm13 = vmor %vm352_vm11, %vm353_vm10  ;;  %vm667_vm5 = vweird.f32 %v993_v47 }
 0x4a3   :  { %v349_v48 = vsub.f32 1.0, %v348_v46  ;;  %vm668_vm7 = vmor %vm666_vm6, %vm667_vm5  ;;  %vm896_vm5 = vcmask 517120  }
 0x4a4   :  { %v663_v57 = vsub.f32 1.0, %v662_v34 }
 0x4a5   :  { %v350_v52 = vmul.f32 %v991_v26, %v349_v48 }
 0x4a6   :  { %v664_v2 = vmul.f32 %v993_v47, %v663_v57 }
 0x4a7   :  { %v351_v54 = vadd.f32 %v991_v26, %v350_v52 }
 0x4a8   :  { %v665_v5 = vadd.f32 %v993_v47, %v664_v2 }
 0x4a9   :  { %v355_v58 = vsel %vm354_vm13, %v991_v26, %v351_v54 }
 0x4aa   :  { %v360_v62 = vsel %vm357_vm14, %v359_v55, %v355_v58  ;;  %v669_v8 = vsel %vm668_vm7, %v993_v47, %v665_v5 }
 0x4ab   :  { %v361_v0 = vmul.f32 %v1208_v61, %v360_v62  ;;  %v519_v61 = vmul.f32 %v1189_v43, %v518_v4  ;;  %v674_v10 = vsel %vm671_vm8, %v673_v9, %v669_v8  ;;  %v767_v43 = vld [vmem:[%s1308_s2 + $0x38] sm:$0xff] }
 0x4ac   :  { %v675_v11 = vmul.f32 %v1195_v49, %v674_v10  ;;  %786 = vmatpush.msrb.mxu0 %v767_v43  ;;  %v765_v49 = vld [vmem:[%s1308_s2 + $0x28] sm:$0xff] }
 0x4ad   :  { %930 = vmatmul.msk.f32.vlgmr.msrb.gmra.mxu3 %vm163_vm2, %v361_v0 }
 0x4ae   :  { %787 = vmatpush.msrb.mxu0 %v766_v15 }
 0x4b0   :  { %788 = vmatpush.msrb.mxu0 %v765_v49 }
 0x4b1   :  { %v703_v6 = vpop.permute.xlu1 %702 }
 0x4b2   :  { %723 = vmatpush.msrb.mxu3 %v703_v6  ;;  %789 = vmatpush.msrb.mxu0 %v764_v16 }
 0x4b4   :  { %790 = vmatpush.msrb.mxu0 %v763_v17 }
 0x4b5   :  { %936 = vmatmul.msk.f32.vlgmr.msra.gmra.mxu3 %vm163_vm2, %v519_v61 }
 0x4b6   :  { %791 = vmatpush.msrb.mxu0 %v762_v18 }
 0x4b8   :  { %792 = vmatpush.msrb.mxu0 %v761_v19 }
 0x4ba   :  { %793 = vmatpush.msrb.mxu0 %v760_v20 }
 0x4bd   :  { %942 = vmatmul.msk.f32.vlgmr.msrb.gmra.mxu3 %vm163_vm2, %v675_v11  ;;  %vm754_vm2 = vcmask 261120  }
 0x4c5   :  { %v386_v12 = vpop.f32.mrf.mxu2 }
 0x4c6   :  { %730 = vrot.lane.b32.xlu0 %v386_v12, %s1060_s24 }
 0x4cd   :  { %v543_v14 = vpop.f32.mrf.mxu2 }
 0x4ce   :  { %738 = vrot.lane.b32.xlu2 %v543_v14, %s1061_s28 }
 0x4d5   :  { %v699_v63 = vpop.f32.mrf.mxu2 }
 0x4d6   :  { %746 = vrot.lane.b32.xlu1 %v699_v63, %s1063_s29 }
 0x528   :  { %v739_v29 = vpop.permute.xlu2 %738 }
 0x530   :  { %v413_v22 = vpop.f32.mrf.mxu3 }
 0x531   :  { %732 = vrot.lane.b32.xlu0 %v413_v22, %s1060_s24 }
 0x538   :  { %v569_v24 = vpop.f32.mrf.mxu3  ;;  %v731_v27 = vpop.permute.xlu0 %730 }
 0x539   :  { %740 = vrot.lane.b32.xlu2 %v569_v24, %s1061_s28  ;;  %v752_v28 = vsel %vm111_vm1, %v1166_v13, %v731_v27  ;;  %s905_s28 = sshll.u32 %s1311_s5, 4  ;;  %s906_s28 = int_to_ptr.hbm [resolvable:$true] %s905_s28 }
 0x53a   :  { %v755_v30 = vsel %vm754_vm2, %v752_v28, %v739_v29 }
 0x540   :  { %v725_v25 = vpop.f32.mrf.mxu3 }
 0x541   :  { %748 = vrot.lane.b32.xlu1 %v725_v25, %s1063_s29 }
 0x548   :  { %v747_v31 = vpop.permute.xlu1 %746 }
 0x549   :  { %v1280_v32 = vsel %vm757_vm9, %v755_v30, %v747_v31 }
 0x54a   :  { %943 = vmatmul.msk.f32.vlgmr.msrb.gmra.mxu0 %vm55_vm0, %v1280_v32 }
 0x593   :  { %v741_v36 = vpop.permute.xlu2 %740 }
 0x5a3   :  { %v733_v23 = vpop.permute.xlu0 %732 }
 0x5a4   :  { %v753_v35 = vsel %vm111_vm1, %v1182_v33, %v733_v23  ;;  %v961_v33 = vld [vmem:[%s1310_s4] ss:$0 sm:$0xff]  ;;  %s903_s4 = sshll.u32 %s1067_s3, 4  ;;  %s904_s4 = int_to_ptr.vmem [resolvable:$true] %s903_s4 }
 0x5a5   :  { %v756_v38 = vsel %vm754_vm2, %v753_v35, %v741_v36 }
 0x5b3   :  { %v749_v37 = vpop.permute.xlu1 %748 }
 0x5b4   :  { %v1287_v13 = vsel %vm757_vm9, %v756_v38, %v749_v37 }
 0x5b5   :  { %944 = vmatmul.msk.f32.gmra.mxu0 %vm55_vm0, %v1287_v13 }
 0x5c7   :  { %v795_v40 = vpop.f32.mrf.mxu0 }
 0x5c8   :  { %v796_v41 = vadd.f32 %v960_v39, %v795_v40 }
 0x5ca   :  { %994 = vtanh.f32 %v796_v41 }
 0x5d0   :  { %v995_v42 = vpop.eup %994 }
 0x5d1   :  { %v807_v44 = vmul.f32 %v995_v42, %v961_v33 }
 0x5d3   :  { %v809_v26 = vsel %vm754_vm2, %v807_v44, 0.0 }
 0x5d4   :  { %810 = vadd.xlane.f32.xlu0 %v809_v26 }
 0x632   :  { %v798_v45 = vpop.f32.mrf.mxu0 }
 0x633   :  { %v799_v46 = vadd.f32 %v960_v39, %v798_v45 }
 0x635   :  { %996 = vtanh.f32 %v799_v46 }
 0x63b   :  { %v997_v47 = vpop.eup %996 }
 0x63c   :  { %v808_v48 = vmul.f32 %v997_v47, %v961_v33 }
 0x63e   :  { %v812_v50 = vsel %vm754_vm2, %v808_v48, 0.0 }
 0x63f   :  { %813 = vadd.xlane.f32.xlu2 %v812_v50 }
 0x647   :  { %v811_v51 = vpop.xlane.xlu0 %810 }
 0x648   :  { %v815_v34 = vrot.slane %v811_v51, 4 }
 0x64a   :  { %v816_v52 = vmax.f32 %v811_v51, %v815_v34 }
 0x64c   :  { %v817_v53 = vrot.slane %v816_v52, 2 }
 0x64e   :  { %v818_v54 = vmax.f32 %v816_v52, %v817_v53 }
 0x650   :  { %v819_v55 = vrot.slane %v818_v54, 1 }
 0x652   :  { %v820_v56 = vmax.f32 %v818_v54, %v819_v55 }
 0x654   :  { %v827_v57 = vsub.f32 %v811_v51, %v820_v56 }
 0x656   :  { %v829_v58 = vmul.f32 1.442695, %v827_v57 }
 0x658   :  { %998 = vpow2.f32 %v829_v58 }
 0x65e   :  { %v999_v59 = vpop.eup %998 }
 0x65f   :  { %v833_v62 = vrot.slane %v999_v59, 4 }
 0x661   :  { %v834_v21 = vadd.f32 %v999_v59, %v833_v62 }
 0x663   :  { %v835_v0 = vrot.slane %v834_v21, 2 }
 0x665   :  { %v836_v1 = vadd.f32 %v835_v0, %v834_v21 }
 0x667   :  { %v837_v2 = vrot.slane %v836_v1, 1 }
 0x669   :  { %v838_v5 = vadd.f32 %v837_v2, %v836_v1 }
 0x66b   :  { %1000 = vrcp.f32 %v838_v5  ;;  %v856_v17 = vand.u32 2147483648, %v838_v5  ;;  %vm850_vm10 = vweird.f32 %v838_v5  ;;  %v854_v19 = vand.u32 2147483647, %v838_v5 }
 0x66d   :  { %v857_v24 = vor.u32 1.1754944e-38, %v856_v17  ;;  %vm855_vm12 = vcmp.eq.f32.partialorder %v854_v19, 8.507059e+37 }
 0x671   :  { %v1001_v9 = vpop.eup %1000 }
 0x672   :  { %v846_v11 = vmul.f32 %v1001_v9, %v838_v5  ;;  %vm851_vm1 = vweird.f32 %v1001_v9 }
 0x673   :  { %vm852_vm11 = vmor %vm850_vm10, %vm851_vm1 }
 0x674   :  { %v847_v14 = vsub.f32 1.0, %v846_v11 }
 0x676   :  { %v848_v43 = vmul.f32 %v1001_v9, %v847_v14 }
 0x678   :  { %v849_v16 = vadd.f32 %v1001_v9, %v848_v43 }
 0x67a   :  { %v853_v22 = vsel %vm852_vm11, %v1001_v9, %v849_v16 }
 0x67b   :  { %v858_v27 = vsel %vm855_vm12, %v857_v24, %v853_v22 }
 0x67c   :  { %v859_v29 = vmul.f32 %v999_v59, %v858_v27 }
 0x67e   :  { %v875_v30 = vmul.f32 %v859_v29, %v1280_v32 }
 0x680   :  { %v877_v36 = vsel %vm55_vm0, %v875_v30, 0.0 }
 0x681   :  { %v878_v40 = vrot.slane %v877_v36, 4 }
 0x683   :  { %v879_v26 = vadd.f32 %v878_v40, %v877_v36 }
 0x685   :  { %v880_v46 = vrot.slane %v879_v26, 2 }
 0x687   :  { %v881_v50 = vadd.f32 %v880_v46, %v879_v26 }
 0x689   :  { %v882_v52 = vrot.slane %v881_v50, 1 }
 0x68b   :  { %v883_v55 = vadd.f32 %v882_v52, %v881_v50 }
 0x6b2   :  { %v814_v3 = vpop.xlane.xlu2 %813 }
 0x6b3   :  { %v821_v4 = vrot.slane %v814_v3, 4 }
 0x6b5   :  { %v822_v6 = vmax.f32 %v814_v3, %v821_v4 }
 0x6b7   :  { %v823_v7 = vrot.slane %v822_v6, 2 }
 0x6b9   :  { %v824_v60 = vmax.f32 %v822_v6, %v823_v7 }
 0x6bb   :  { %v825_v61 = vrot.slane %v824_v60, 1 }
 0x6bd   :  { %v826_v8 = vmax.f32 %v824_v60, %v825_v61 }
 0x6bf   :  { %v828_v10 = vsub.f32 %v814_v3, %v826_v8 }
 0x6c1   :  { %v831_v12 = vmul.f32 1.442695, %v828_v10 }
 0x6c3   :  { %1002 = vpow2.f32 %v831_v12 }
 0x6c9   :  { %v1003_v63 = vpop.eup %1002 }
 0x6ca   :  { %v839_v15 = vrot.slane %v1003_v63, 4 }
 0x6cc   :  { %v840_v49 = vadd.f32 %v1003_v63, %v839_v15 }
 0x6ce   :  { %v841_v18 = vrot.slane %v840_v49, 2 }
 0x6d0   :  { %v842_v20 = vadd.f32 %v841_v18, %v840_v49 }
 0x6d2   :  { %v843_v25 = vrot.slane %v842_v20, 1 }
 0x6d4   :  { %v844_v28 = vadd.f32 %v843_v25, %v842_v20 }
 0x6d6   :  { %1004 = vrcp.f32 %v844_v28  ;;  %v871_v37 = vand.u32 2147483648, %v844_v28  ;;  %v869_v39 = vand.u32 2147483647, %v844_v28  ;;  %vm865_vm14 = vweird.f32 %v844_v28 }
 0x6d8   :  { %v872_v33 = vor.u32 1.1754944e-38, %v871_v37  ;;  %vm870_vm3 = vcmp.eq.f32.partialorder %v869_v39, 8.507059e+37 }
 0x6dc   :  { %v1005_v31 = vpop.eup %1004 }
 0x6dd   :  { %v861_v23 = vmul.f32 %v1005_v31, %v844_v28  ;;  %vm866_vm13 = vweird.f32 %v1005_v31 }
 0x6de   :  { %vm867_vm15 = vmor %vm865_vm14, %vm866_vm13 }
 0x6df   :  { %v862_v35 = vsub.f32 1.0, %v861_v23 }
 0x6e1   :  { %v863_v38 = vmul.f32 %v1005_v31, %v862_v35 }
 0x6e3   :  { %v864_v41 = vadd.f32 %v1005_v31, %v863_v38 }
 0x6e5   :  { %v868_v42 = vsel %vm867_vm15, %v1005_v31, %v864_v41 }
 0x6e6   :  { %v873_v44 = vsel %vm870_vm3, %v872_v33, %v868_v42 }
 0x6e7   :  { %v874_v45 = vmul.f32 %v1003_v63, %v873_v44 }
 0x6e9   :  { %v876_v32 = vmul.f32 %v874_v45, %v1287_v13 }
 0x6eb   :  { %v884_v47 = vsel %vm55_vm0, %v876_v32, 0.0 }
 0x6ec   :  { %v885_v48 = vrot.slane %v884_v47, 4 }
 0x6ee   :  { %v886_v51 = vadd.f32 %v885_v48, %v884_v47 }
 0x6f0   :  { %v887_v34 = vrot.slane %v886_v51, 2 }
 0x6f2   :  { %v888_v53 = vadd.f32 %v887_v34, %v886_v51 }
 0x6f4   :  { %v889_v54 = vrot.slane %v888_v53, 1 }
 0x6f6   :  { %v890_v56 = vadd.f32 %v889_v54, %v888_v53 }
 0x6f8   :  { %v894_v13 = vsel %vm893_vm4, %v890_v56, %v883_v55 }
 0x6f9   :  { %897 = vst.msk [vmem:[#allocation5] sm:$0x3] %vm896_vm5, %v894_v13 }
 0x6fa   :  { %908 = dma.vmem_to_hbm [thread:$0]  %s904_s4, 32, %s906_s28, [#allocation4]  }
 0x6fb   :  { %1056 = dma.done.wait [#allocation4], 32  }
 0x6fc   :  { %1057 = vsyncadd [#allocation4], 4294967264 }
 0x6fd   :  { %913 = vsyncpa [#allocation3], 1 }
 0x6fe   :  { %914 = vsyncpa [#allocation4], 1 }

</bundles_post_ra>
